<compile_context>
chip_gen: v7x
topology: tpu7x:2x2x1
jax: 0.10.0
libtpu: 0.0.40
codegen_flags: <defaults>
</compile_context>

<pallas_src>
import jax
import jax.numpy as jnp
from jax.experimental import pallas as pl
from jax.experimental.pallas import tpu as pltpu


def _round_up(n: int, m: int) -> int:
    return ((n + m - 1) // m) * m


def linear_block_kernel(x_ref, w_ref, b_ref, o_ref, acc_ref):
    # x_ref: (tm, tk) bf16, w_ref: (tk, tn) bf16, b_ref: (1, tn) f32
    # o_ref: (tm, tn) f32, acc_ref: (tm, tn) f32 scratch accumulator
    k = pl.program_id(2)

    @pl.when(k == 0)
    def _():
        acc_ref[...] = jnp.zeros_like(acc_ref)

    # MXU matmul with f32 accumulation; RHS already (K, N) lane-dense.
    acc_ref[...] += jnp.dot(
        x_ref[...], w_ref[...], preferred_element_type=jnp.float32
    )

    @pl.when(k == pl.num_programs(2) - 1)
    def _():
        y = acc_ref[...] + b_ref[...]
        # HalfLinear produces a bf16 result, then casts to float32.
        y = y.astype(jnp.bfloat16).astype(jnp.float32)
        # ReLU on the float32 result; dropout (eval) is identity.
        o_ref[...] = jnp.maximum(y, 0.0)


def linear_block(x, weight, bias, *, tm=256, tn=256, tk=512):
    """x: (B, IN) float. weight: (OUT, IN) bf16 (PyTorch layout). bias: (OUT,) bf16.

    Returns float32 (B, OUT). For tiny shapes the pallas_call launch overhead
    dominates; the kernel's value appears at production B/IN/OUT.
    """
    B, IN = x.shape
    OUT, IN2 = weight.shape
    assert IN == IN2, "weight shape mismatch"

    # Clamp tile sizes for small problems, keeping 128-lane / sublane alignment.
    tm = min(tm, _round_up(B, 128))
    tn = min(tn, _round_up(OUT, 128))
    tk = min(tk, _round_up(IN, 128))

    Bp = _round_up(B, tm)
    Np = _round_up(OUT, tn)
    Kp = _round_up(IN, tk)

    # HalfLinear casts the input to bf16. Zero-pad to tile-aligned shapes.
    x_bf16 = jnp.zeros((Bp, Kp), jnp.bfloat16).at[:B, :IN].set(
        x.astype(jnp.bfloat16)
    )
    # Pre-transpose the weight once -> (IN, OUT) lane-dense RHS for the MXU.
    w_t = jnp.zeros((Kp, Np), jnp.bfloat16).at[:IN, :OUT].set(
        weight.astype(jnp.bfloat16).T
    )
    bias2d = jnp.zeros((1, Np), jnp.float32).at[:, :OUT].set(
        bias.astype(jnp.float32)
    )

    grid = (Bp // tm, Np // tn, Kp // tk)

    out_padded = pl.pallas_call(
        linear_block_kernel,
        out_shape=jax.ShapeDtypeStruct((Bp, Np), jnp.float32),
        grid=grid,
        in_specs=[
            pl.BlockSpec((tm, tk), lambda i, j, k: (i, k)),   # x tile
            pl.BlockSpec((tk, tn), lambda i, j, k: (k, j)),   # w^T tile
            pl.BlockSpec((1, tn), lambda i, j, k: (0, j)),    # bias column block
        ],
        out_specs=pl.BlockSpec((tm, tn), lambda i, j, k: (i, j)),
        scratch_shapes=[pltpu.VMEM((tm, tn), jnp.float32)],
        compiler_params=pltpu.CompilerParams(
            dimension_semantics=("parallel", "parallel", "arbitrary"),
        ),
        cost_estimate=pl.CostEstimate(
            flops=2 * Bp * Kp * Np,
            transcendentals=0,
            bytes_accessed=Bp * Kp * 2 + Kp * Np * 2 + Np * 4 + Bp * Np * 4,
        ),
    )(x_bf16, w_t, bias2d)

    return out_padded[:B, :OUT]


if __name__ == "__main__":
    # Small shapes implied by the module: Linear(in_features, out_features).
    B, IN, OUT = 8, 32, 64
    key = jax.random.PRNGKey(0)
    kx, kw, kb = jax.random.split(key, 3)

    x = jax.random.normal(kx, (B, IN), dtype=jnp.float32)
    weight = (jax.random.normal(kw, (OUT, IN), dtype=jnp.float32) * 0.1).astype(
        jnp.bfloat16
    )
    bias = (jax.random.normal(kb, (OUT,), dtype=jnp.float32) * 0.1).astype(
        jnp.bfloat16
    )

    out = linear_block(x, weight, bias)
    out = jax.block_until_ready(out)

    # Reference check in plain JAX (same semantics).
    ref = jnp.dot(
        x.astype(jnp.bfloat16), weight.T, preferred_element_type=jnp.float32
    ) + bias.astype(jnp.float32)
    ref = jnp.maximum(ref.astype(jnp.bfloat16).astype(jnp.float32), 0.0)

    assert out.shape == (B, OUT) and out.dtype == jnp.float32
    assert jnp.allclose(out, ref, atol=1e-2, rtol=1e-2)

    print("KERNEL_OK")
</pallas_src>

<mosaic_0001>
module attributes {stable_mosaic.version = 11 : i64} {
  func.func @linear_block_kernel(%arg0: i32, %arg1: i32, %arg2: i32, %arg3: memref<128x128xbf16, #tpu.memory_space<vmem>>, %arg4: memref<128x128xbf16, #tpu.memory_space<vmem>>, %arg5: memref<1x128xf32, #tpu.memory_space<vmem>>, %arg6: memref<128x128xf32, #tpu.memory_space<vmem>>, %arg7: memref<128x128xf32, #tpu.memory_space<vmem>>) attributes {dimension_semantics = [#tpu.dimension_semantics<parallel>, #tpu.dimension_semantics<parallel>, #tpu.dimension_semantics<arbitrary>], iteration_bounds = array<i64: 1, 1, 1>, scalar_prefetch = 0 : i64, scratch_operands = 1 : i64, tpu.core_type = #tpu.core_type<tc>, window_params = [{transform_indices = @transform_0, window_bounds = array<i64: 128, 128>}, {transform_indices = @transform_1, window_bounds = array<i64: 128, 128>}, {transform_indices = @transform_2, window_bounds = array<i64: 1, 128>}, {transform_indices = @transform_3, window_bounds = array<i64: 128, 128>}]} {
    %c0_i32 = arith.constant 0 : i32
    %0 = arith.cmpi eq, %arg2, %c0_i32 : i32
    %1 = arith.extui %0 : i1 to i32
    %c0_i32_0 = arith.constant 0 : i32
    %2 = arith.cmpi ne, %1, %c0_i32_0 : i32
    scf.if %2 {
      %cst_10 = arith.constant 0.000000e+00 : f32
      %12 = vector.broadcast %cst_10 : f32 to vector<128x128xf32>
      %c0_11 = arith.constant 0 : index
      %c0_12 = arith.constant 0 : index
      %13 = vector.load %arg7[%c0_11, %c0_12] : memref<128x128xf32, #tpu.memory_space<vmem>>, vector<128x128xf32>
      tpu.vector_store %arg7[%c0_11, %c0_12], %12 {strides = array<i32>} : memref<128x128xf32, #tpu.memory_space<vmem>>, vector<128x128xf32>,
    } else {
    }
    %c0 = arith.constant 0 : index
    %c0_1 = arith.constant 0 : index
    %3 = vector.load %arg7[%c0, %c0_1] : memref<128x128xf32, #tpu.memory_space<vmem>>, vector<128x128xf32>
    %c0_2 = arith.constant 0 : index
    %c0_3 = arith.constant 0 : index
    %4 = vector.load %arg3[%c0_2, %c0_3] : memref<128x128xbf16, #tpu.memory_space<vmem>>, vector<128x128xbf16>
    %c0_4 = arith.constant 0 : index
    %c0_5 = arith.constant 0 : index
    %5 = vector.load %arg4[%c0_4, %c0_5] : memref<128x128xbf16, #tpu.memory_space<vmem>>, vector<128x128xbf16>
    %cst = arith.constant dense<0.000000e+00> : vector<128x128xf32>
    %6 = tpu.matmul %4, %5, %cst {dimension_numbers = #tpu.dot_dimension_numbers<[1], [0], [0], [1], [0, 0, 1, 1], [], []>} : vector<128x128xbf16>, vector<128x128xbf16>, vector<128x128xf32> -> vector<128x128xf32>
    %7 = arith.addf %3, %6 : vector<128x128xf32>
    %c0_6 = arith.constant 0 : index
    %c0_7 = arith.constant 0 : index
    %8 = vector.load %arg7[%c0_6, %c0_7] : memref<128x128xf32, #tpu.memory_space<vmem>>, vector<128x128xf32>
    tpu.vector_store %arg7[%c0_6, %c0_7], %7 {strides = array<i32>} : memref<128x128xf32, #tpu.memory_space<vmem>>, vector<128x128xf32>,
    %c0_i32_8 = arith.constant 0 : i32
    %9 = arith.cmpi eq, %arg2, %c0_i32_8 : i32
    %10 = arith.extui %9 : i1 to i32
    %c0_i32_9 = arith.constant 0 : i32
    %11 = arith.cmpi ne, %10, %c0_i32_9 : i32
    scf.if %11 {
      %c0_10 = arith.constant 0 : index
      %c0_11 = arith.constant 0 : index
      %12 = vector.load %arg7[%c0_10, %c0_11] : memref<128x128xf32, #tpu.memory_space<vmem>>, vector<128x128xf32>
      %c0_12 = arith.constant 0 : index
      %c0_13 = arith.constant 0 : index
      %13 = vector.load %arg5[%c0_12, %c0_13] : memref<1x128xf32, #tpu.memory_space<vmem>>, vector<1x128xf32>
      %14 = vector.broadcast %13 : vector<1x128xf32> to vector<128x128xf32>
      %15 = arith.addf %12, %14 : vector<128x128xf32>
      %16 = arith.truncf %15 : vector<128x128xf32> to vector<128x128xbf16>
      %17 = arith.extf %16 : vector<128x128xbf16> to vector<128x128xf32>
      %cst_14 = arith.constant 0.000000e+00 : f32
      %18 = vector.broadcast %cst_14 : f32 to vector<128x128xf32>
      %19 = arith.maximumf %17, %18 : vector<128x128xf32>
      %c0_15 = arith.constant 0 : index
      %c0_16 = arith.constant 0 : index
      %20 = vector.load %arg6[%c0_15, %c0_16] : memref<128x128xf32, #tpu.memory_space<vmem>>, vector<128x128xf32>
      tpu.vector_store %arg6[%c0_15, %c0_16], %19 {strides = array<i32>} : memref<128x128xf32, #tpu.memory_space<vmem>>, vector<128x128xf32>,
    } else {
    }
    return
  }
  func.func @transform_0(%arg0: i32, %arg1: i32, %arg2: i32) -> (i32, i32) {
    %c0_i32 = arith.constant 0 : i32
    return %arg0, %arg2 : i32, i32
  }
  func.func @transform_1(%arg0: i32, %arg1: i32, %arg2: i32) -> (i32, i32) {
    %c0_i32 = arith.constant 0 : i32
    return %arg2, %arg1 : i32, i32
  }
  func.func @transform_2(%arg0: i32, %arg1: i32, %arg2: i32) -> (i32, i32) {
    %c0_i32 = arith.constant 0 : i32
    %c0_i32_0 = arith.constant 0 : i32
    return %c0_i32, %arg1 : i32, i32
  }
  func.func @transform_3(%arg0: i32, %arg1: i32, %arg2: i32) -> (i32, i32) {
    %c0_i32 = arith.constant 0 : i32
    return %arg0, %arg1 : i32, i32
  }
}

</mosaic_0001>

<bundles_post_ra>
// kernel: tpu_custom_call.1
= control target key start
LH: loop header
LB: loop body
LE: loop exit
PB: predicated region body
PF: predicated region fallthrough
CT: control target
= control target key end

     0   :  { %8 = vsyncpa [#allocation4], 0  ;;  %s695_s0 = inlined_call_operand.hbm [shape: bf16[128,128], index: 0, kind: input, shape index: {}]   ;;  %s696_s1 = inlined_call_operand.hbm [shape: bf16[128,128], index: 1, kind: input, shape index: {}]   ;;  %s697_s2 = inlined_call_operand.vmem [shape: f32[1,128], index: 2, kind: input, shape index: {}]   ;;  %s698_s3 = inlined_call_operand.hbm [shape: f32[128,128], index: 3, kind: output, shape index: {}]  }
   0x1   :  { %9 = vsyncpa [#allocation7], 0 }
   0x2   :  { %10 = vsyncpa [#allocation5], 0  ;;  %s629_s12 = smov [#allocation3]   ;;  %s557_s16 = scalar_lea.hbm %s695_s0, 1024 }
   0x3   :  { %s16_s13 = sshll.u32 %s629_s12, 4  ;;  %p558_p0 = scmp.ne.s32.totalorder %s695_s0, %s557_s16  ;;  %s17_s13 = int_to_ptr.vmem [resolvable:$true] %s16_s13 }
   0x4   :  { %p561_p1 = scmp.lt.u32.totalorder %s557_s16, %s695_s0 }
   0x6   :  { %p563_p2 = pnand %p561_p1, %p558_p0 }
   0x8   :  { %566 = shalt.err (!%p563_p2)
}
   0x9   :  { %s567_s21 = scalar_lea.vmem %s17_s13, 1024  ;;  %p572_p4 = scmp.lt.s32.totalorder %s17_s13, %s17_s13 }
   0xa   :  { %p568_p3 = scmp.ne.s32.totalorder %s17_s13, %s567_s21  ;;  %p573_p5 = scmp.lt.s32.totalorder %s567_s21, %s567_s21 }
   0xc   :  { %p574_p6 = por %p573_p5, %p572_p4 }
   0xe   :  { %p575_p7 = pnand %p574_p6, %p568_p3 }
  0x10   :  { %578 = shalt.err (!%p575_p7)
}
  0x11   :  { %s630_s22 = smov 64   ;;  %s631_s23 = smov 4  }
  0x12   :  { %22 = dma.hbm_to_vmem [thread:$0]  %s695_s0, 1024, %s17_s13, [#allocation4], %s630_s22, %s630_s22, %s631_s23  }
  0x13   :  { %s632_s26 = smov [#allocation6]   ;;  %s579_s30 = scalar_lea.hbm %s696_s1, 1024 }
  0x14   :  { %s28_s27 = sshll.u32 %s632_s26, 4  ;;  %p580_p8 = scmp.ne.s32.totalorder %s696_s1, %s579_s30  ;;  %s29_s27 = int_to_ptr.vmem [resolvable:$true] %s28_s27 }
  0x15   :  { %p583_p9 = scmp.lt.u32.totalorder %s579_s30, %s696_s1 }
  0x17   :  { %p585_p10 = pnand %p583_p9, %p580_p8 }
  0x19   :  { %588 = shalt.err (!%p585_p10)
}
  0x1a   :  { %s589_s8 = scalar_lea.vmem %s29_s27, 1024  ;;  %p594_p12 = scmp.lt.s32.totalorder %s29_s27, %s29_s27 }
  0x1b   :  { %p590_p11 = scmp.ne.s32.totalorder %s29_s27, %s589_s8  ;;  %p595_p13 = scmp.lt.s32.totalorder %s589_s8, %s589_s8 }
  0x1d   :  { %p596_p0 = por %p595_p13, %p594_p12 }
  0x1f   :  { %p597_p1 = pnand %p596_p0, %p590_p11 }
  0x21   :  { %600 = shalt.err (!%p597_p1)
}
  0x22   :  { %34 = dma.hbm_to_vmem [thread:$0]  %s696_s1, 1024, %s29_s27, [#allocation7], %s630_s22, %s630_s22, %s631_s23  }
  0x23   :  { %623 = dma.done.wait [#allocation4], 1024  }
  0x24   :  { %624 = vsyncadd [#allocation4], 4294966272 }
  0x25   :  { %625 = dma.done.wait [#allocation7], 1024  }
  0x26   :  { %626 = vsyncadd [#allocation7], 4294966272  ;;  %v541_v0 = vld [vmem:[#allocation6] sm:$0xff]   ;;  %v542_v1 = vld [vmem:[#allocation6 + $0x8] sm:$0xff]  }
  0x27   :  { %486 = vmatprep.subr.bf16.mxu0 %v541_v0  ;;  %518 = vmatprep.subr.bf16.mxu1 %v541_v0  ;;  %v543_v2 = vld [vmem:[#allocation6 + $0x10] sm:$0xff]   ;;  %v544_v3 = vld [vmem:[#allocation6 + $0x18] sm:$0xff]   ;;  %v549_v4 = vld [vmem:[#allocation3] sm:$0xff]  }
  0x28   :  { %487 = vmatpush3.bf16.msra.mxu0 %v541_v0  ;;  %526 = vmatpush3.bf16.msra.mxu1 %v541_v0  ;;  %v550_v5 = vld [vmem:[#allocation3 + $0x20] sm:$0xff]   ;;  %v546_v7 = vld [vmem:[#allocation6 + $0x28] sm:$0xff]   ;;  %v547_v8 = vld [vmem:[#allocation6 + $0x30] sm:$0xff]  }
  0x29   :  { %488 = vmatprep.subr.bf16.mxu0 %v542_v1  ;;  %519 = vmatprep.subr.bf16.mxu1 %v542_v1  ;;  %v545_v6 = vld [vmem:[#allocation6 + $0x20] sm:$0xff]   ;;  %v548_v9 = vld [vmem:[#allocation6 + $0x38] sm:$0xff]   ;;  %v551_v10 = vld [vmem:[#allocation3 + $0x8] sm:$0xff]  }
  0x2a   :  { %502 = vmatprep.mubr.bf16.mxu0 %v549_v4  ;;  %510 = vmatprep.mubr.bf16.mxu1 %v550_v5  ;;  %v552_v11 = vld [vmem:[#allocation3 + $0x28] sm:$0xff]   ;;  %v553_v12 = vld [vmem:[#allocation3 + $0x10] sm:$0xff]   ;;  %v555_v14 = vld [vmem:[#allocation3 + $0x18] sm:$0xff]  }
  0x2b   :  { %v554_v13 = vld [vmem:[#allocation3 + $0x30] sm:$0xff]   ;;  %v556_v15 = vld [vmem:[#allocation3 + $0x38] sm:$0xff]   ;;  %v469_v17 = vld [vmem:[%s697_s2] ss:$0 sm:$0xff]  ;;  %s633_s2 = smov [#allocation8]  }
  0x2c   :  { %489 = vmatpush3.bf16.msra.mxu0 %v542_v1  ;;  %527 = vmatpush3.bf16.msra.mxu1 %v542_v1  ;;  %s440_s11 = sshll.u32 %s633_s2, 4  ;;  %s441_s11 = int_to_ptr.vmem [resolvable:$true] %s440_s11 }
  0x2d   :  { %490 = vmatprep.subr.bf16.mxu0 %v543_v2  ;;  %520 = vmatprep.subr.bf16.mxu1 %v543_v2  ;;  %s601_s12 = scalar_lea.vmem %s441_s11, 2048  ;;  %p606_p3 = scmp.lt.s32.totalorder %s441_s11, %s441_s11 }
  0x2e   :  { %p602_p2 = scmp.ne.s32.totalorder %s441_s11, %s601_s12  ;;  %p607_p4 = scmp.lt.s32.totalorder %s601_s12, %s601_s12 }
  0x30   :  { %491 = vmatpush3.bf16.msra.mxu0 %v543_v2  ;;  %528 = vmatpush3.bf16.msra.mxu1 %v543_v2  ;;  %p608_p5 = por %p607_p4, %p606_p3 }
  0x31   :  { %492 = vmatprep.subr.bf16.mxu0 %v544_v3  ;;  %521 = vmatprep.subr.bf16.mxu1 %v544_v3 }
  0x32   :  { %p609_p6 = pnand %p608_p5, %p602_p2 }
  0x34   :  { %493 = vmatpush3.bf16.msra.mxu0 %v544_v3  ;;  %529 = vmatpush3.bf16.msra.mxu1 %v544_v3 }
  0x35   :  { %494 = vmatprep.subr.bf16.mxu0 %v545_v6  ;;  %522 = vmatprep.subr.bf16.mxu1 %v545_v6 }
  0x38   :  { %495 = vmatpush3.bf16.msra.mxu0 %v545_v6  ;;  %530 = vmatpush3.bf16.msra.mxu1 %v545_v6 }
  0x39   :  { %496 = vmatprep.subr.bf16.mxu0 %v546_v7  ;;  %523 = vmatprep.subr.bf16.mxu1 %v546_v7 }
  0x3c   :  { %497 = vmatpush3.bf16.msra.mxu0 %v546_v7  ;;  %531 = vmatpush3.bf16.msra.mxu1 %v546_v7 }
  0x3d   :  { %498 = vmatprep.subr.bf16.mxu0 %v547_v8  ;;  %524 = vmatprep.subr.bf16.mxu1 %v547_v8 }
  0x40   :  { %499 = vmatpush3.bf16.msra.mxu0 %v547_v8  ;;  %532 = vmatpush3.bf16.msra.mxu1 %v547_v8 }
  0x41   :  { %500 = vmatprep.subr.bf16.mxu0 %v548_v9  ;;  %525 = vmatprep.subr.bf16.mxu1 %v548_v9 }
  0x44   :  { %501 = vmatpush3.bf16.msra.mxu0 %v548_v9  ;;  %533 = vmatpush3.bf16.msra.mxu1 %v548_v9 }
  0x47   :  { %503 = vmatmul.mubr.bf16.vlgmr.msra.gmra.mrb[0].mxu0 %v551_v10  ;;  %511 = vmatmul.mubr.bf16.vlgmr.msra.gmra.mrb[0].mxu1 %v552_v11 }
  0x48   :  { %506 = vmatprep.mubr.bf16.mxu0 %v553_v12  ;;  %514 = vmatprep.mubr.bf16.mxu1 %v554_v13 }
  0x4f   :  { %507 = vmatmul.mubr.bf16.gmra.mrb[4].mxu0 %v555_v14  ;;  %515 = vmatmul.mubr.bf16.gmra.mrb[4].mxu1 %v556_v15 }
 0x11a   :  { %v504_v16 = vpop.f32.mrb[0].mxu0  ;;  %v512_v18 = vpop.f32.mrb[0].mxu1 }
 0x11b   :  { %v242_v19 = vpop.f32.mrb[1].mxu0  ;;  %v274_v20 = vpop.f32.mrb[1].mxu1  ;;  %v365_v23 = vadd.f32 %v504_v16, %v469_v17  ;;  %v373_v24 = vadd.f32 %v512_v18, %v469_v17 }
 0x11c   :  { %v505_v21 = vpop.f32.mrb[2].mxu0  ;;  %v513_v22 = vpop.f32.mrb[2].mxu1  ;;  %v363_v29 = vadd.f32 %v469_v17, %v242_v19  ;;  %v371_v30 = vadd.f32 %v469_v17, %v274_v20 }
 0x11d   :  { %v366_v25 = vadd.f32 %v505_v21, %v469_v17  ;;  %v374_v26 = vadd.f32 %v513_v22, %v469_v17  ;;  %v245_v27 = vpop.f32.mrb[3].mxu0  ;;  %v277_v28 = vpop.f32.mrb[3].mxu1 }
 0x11e   :  { %v364_v31 = vadd.f32 %v469_v17, %v245_v27  ;;  %v372_v32 = vadd.f32 %v469_v17, %v277_v28 }
 0x11f   :  { %v380_v33 = vpack.c.bf16 %v366_v25, %v365_v23  ;;  %v384_v34 = vpack.c.bf16 %v374_v26, %v373_v24 }
 0x120   :  { %v379_v35 = vpack.c.bf16 %v364_v31, %v363_v29  ;;  %v383_v36 = vpack.c.bf16 %v372_v32, %v371_v30 }
 0x121   :  { %v389_v37 = vunpack.c.l.bf16 %v380_v33  ;;  %v390_v38 = vunpack.c.h.bf16 %v380_v33  ;;  %v397_v39 = vunpack.c.l.bf16 %v384_v34  ;;  %v398_v40 = vunpack.c.h.bf16 %v384_v34 }
 0x122   :  { %v387_v41 = vunpack.c.l.bf16 %v379_v35  ;;  %v388_v42 = vunpack.c.h.bf16 %v379_v35  ;;  %v395_v43 = vunpack.c.l.bf16 %v383_v36  ;;  %v396_v44 = vunpack.c.h.bf16 %v383_v36  ;;  %v508_v45 = vpop.f32.mrb[4].mxu0  ;;  %v516_v46 = vpop.f32.mrb[4].mxu1 }
 0x123   :  { %v405_v47 = vmax.f32 %v389_v37, 0.0  ;;  %v406_v48 = vmax.f32 %v390_v38, 0.0  ;;  %v413_v49 = vmax.f32 %v397_v39, 0.0  ;;  %v414_v50 = vmax.f32 %v398_v40, 0.0  ;;  %v258_v51 = vpop.f32.mrb[5].mxu0  ;;  %v290_v52 = vpop.f32.mrb[5].mxu1 }
 0x124   :  { %v403_v53 = vmax.f32 %v387_v41, 0.0  ;;  %v404_v54 = vmax.f32 %v388_v42, 0.0  ;;  %v411_v55 = vmax.f32 %v395_v43, 0.0  ;;  %v412_v56 = vmax.f32 %v396_v44, 0.0  ;;  %v509_v57 = vpop.f32.mrb[6].mxu0  ;;  %v517_v58 = vpop.f32.mrb[6].mxu1 }
 0x125   :  { %421 = vst [vmem:[#allocation8 + $0x10] sm:$0xff] %v405_v47  ;;  %422 = vst [vmem:[#allocation8 + $0x18] sm:$0xff] %v406_v48  ;;  %v369_v59 = vadd.f32 %v508_v45, %v469_v17  ;;  %v377_v60 = vadd.f32 %v516_v46, %v469_v17  ;;  %v367_v61 = vadd.f32 %v469_v17, %v258_v51  ;;  %v261_v63 = vpop.f32.mrb[7].mxu0  ;;  %v293_v0 = vpop.f32.mrb[7].mxu1 }
 0x126   :  { %429 = vst [vmem:[#allocation8 + $0x50] sm:$0xff] %v413_v49  ;;  %430 = vst [vmem:[#allocation8 + $0x58] sm:$0xff] %v414_v50  ;;  %v375_v62 = vadd.f32 %v469_v17, %v290_v52  ;;  %v370_v1 = vadd.f32 %v509_v57, %v469_v17  ;;  %v378_v2 = vadd.f32 %v517_v58, %v469_v17 }
 0x127   :  { %419 = vst [vmem:[#allocation8] sm:$0xff] %v403_v53  ;;  %420 = vst [vmem:[#allocation8 + $0x8] sm:$0xff] %v404_v54  ;;  %v368_v3 = vadd.f32 %v469_v17, %v261_v63  ;;  %v376_v4 = vadd.f32 %v469_v17, %v293_v0 }
 0x128   :  { %427 = vst [vmem:[#allocation8 + $0x40] sm:$0xff] %v411_v55  ;;  %428 = vst [vmem:[#allocation8 + $0x48] sm:$0xff] %v412_v56  ;;  %v382_v5 = vpack.c.bf16 %v370_v1, %v369_v59  ;;  %v386_v6 = vpack.c.bf16 %v378_v2, %v377_v60 }
 0x129   :  { %v381_v7 = vpack.c.bf16 %v368_v3, %v367_v61  ;;  %v385_v8 = vpack.c.bf16 %v376_v4, %v375_v62 }
 0x12a   :  { %v393_v9 = vunpack.c.l.bf16 %v382_v5  ;;  %v394_v10 = vunpack.c.h.bf16 %v382_v5  ;;  %v401_v11 = vunpack.c.l.bf16 %v386_v6  ;;  %v402_v12 = vunpack.c.h.bf16 %v386_v6 }
 0x12b   :  { %v391_v13 = vunpack.c.l.bf16 %v381_v7  ;;  %v392_v14 = vunpack.c.h.bf16 %v381_v7  ;;  %v399_v15 = vunpack.c.l.bf16 %v385_v8  ;;  %v400_v16 = vunpack.c.h.bf16 %v385_v8 }
 0x12c   :  { %v409_v18 = vmax.f32 %v393_v9, 0.0  ;;  %v410_v19 = vmax.f32 %v394_v10, 0.0  ;;  %v417_v20 = vmax.f32 %v401_v11, 0.0  ;;  %v418_v21 = vmax.f32 %v402_v12, 0.0 }
 0x12d   :  { %v407_v22 = vmax.f32 %v391_v13, 0.0  ;;  %v408_v17 = vmax.f32 %v392_v14, 0.0  ;;  %v415_v23 = vmax.f32 %v399_v15, 0.0  ;;  %v416_v24 = vmax.f32 %v400_v16, 0.0 }
 0x12e   :  { %425 = vst [vmem:[#allocation8 + $0x30] sm:$0xff] %v409_v18  ;;  %426 = vst [vmem:[#allocation8 + $0x38] sm:$0xff] %v410_v19 }
 0x12f   :  { %433 = vst [vmem:[#allocation8 + $0x70] sm:$0xff] %v417_v20  ;;  %434 = vst [vmem:[#allocation8 + $0x78] sm:$0xff] %v418_v21 }
 0x130   :  { %423 = vst [vmem:[#allocation8 + $0x20] sm:$0xff] %v407_v22  ;;  %424 = vst [vmem:[#allocation8 + $0x28] sm:$0xff] %v408_v17 }
 0x131   :  { %431 = vst [vmem:[#allocation8 + $0x60] sm:$0xff] %v415_v23  ;;  %432 = vst [vmem:[#allocation8 + $0x68] sm:$0xff] %v416_v24 }
 0x132   :  { %612 = shalt.err (!%p609_p6)
}
 0x133   :  { %s613_s15 = scalar_lea.hbm %s698_s3, 2048 }
 0x134   :  { %p614_p7 = scmp.ne.s32.totalorder %s698_s3, %s613_s15  ;;  %p617_p8 = scmp.lt.u32.totalorder %s613_s15, %s698_s3 }
 0x136   :  { %p619_p9 = pnand %p617_p8, %p614_p7 }
 0x138   :  { %622 = shalt.err (!%p619_p9)
}
 0x139   :  { %s634_s20 = smov 128   ;;  %s635_s21 = smov 8  }
 0x13a   :  { %446 = dma.vmem_to_hbm [thread:$0]  %s441_s11, 2048, %s698_s3, [#allocation5], %s634_s20, %s634_s20, %s635_s21  }
 0x13b   :  { %627 = dma.done.wait [#allocation5], 2048  }
 0x13c   :  { %628 = vsyncadd [#allocation5], 4294965248 }
 0x13d   :  { %450 = vsyncpa [#allocation4], 1 }
 0x13e   :  { %451 = vsyncpa [#allocation7], 1 }
 0x13f   :  { %452 = vsyncpa [#allocation5], 1 }

</bundles_post_ra>
